<compile_context>
chip_gen: v5e
topology: v5e:2x2
jax: 0.10.0
libtpu: 0.0.40
codegen_flags: <defaults>
</compile_context>

<pallas_src>
import jax
import jax.numpy as jnp
from jax import lax
from jax.experimental import pallas as pl
from jax.experimental.pallas import tpu as pltpu

# ---------------------------------------------------------------------------
# Model hyper-parameters (small, consistent with the module's __init__)
# ---------------------------------------------------------------------------
VOCAB = 64      # vocab_size
EMBED = 32      # embed_dim
HIDDEN = 32     # rnn_hidden_dim
BATCH = 2
SEQ = 8
LN_EPS = 1e-5   # torch.nn.LayerNorm default

LANES = 128     # lane-dense width used for every slab row and the logits output

# Static row offsets of each section inside the packed parameter slab.
R_GI = 0                        # (VOCAB, 3H) pre-projected token gates (+ folded biases)
R_WHH = VOCAB                   # (H, 3H)     W_hh^T                      -> rows 64:96
R_WFC = VOCAB + HIDDEN          # (H, V)      gamma-scaled fc weight^T    -> rows 96:128
R_BHN = VOCAB + 2 * HIDDEN      # (1, 128)    b_hn at cols [2H:3H]        -> row 128
R_BFC = R_BHN + 8               # (1, 128)    beta @ fc_w^T + fc_b        -> row 136
SLAB_ROWS = R_BFC + 8           # 144 rows, multiple of 8 -> clean (8,128) tiling


# ---------------------------------------------------------------------------
# Pallas kernel: in-kernel gather + GRU recurrence + LayerNorm + Linear
# ---------------------------------------------------------------------------
def recurrent_lm_kernel(
    ids_ref,      # (B*T,)        int32  token ids in SMEM (scalar prefetch), row = b*T + t
    slab_ref,     # (144, 128)    f32    packed parameter slab (VMEM)
    logits_ref,   # (T*B, 128)    f32    lane-dense logits, time-major rows (t*B + b)
    hfin_ref,     # (1, B, H)     f32    final hidden state (torch GRU layout)
):
    B = hfin_ref.shape[1]
    H = HIDDEN
    T = logits_ref.shape[0] // B

    # Static, tile-aligned slices of the parameter slab (loaded once).
    whh = slab_ref[R_WHH:R_WHH + H, :]      # (H, 128), cols 3H: are zero
    bhn = slab_ref[R_BHN:R_BHN + 1, :]      # (1, 128), b_hn at cols 2H:3H, zero elsewhere
    wfc = slab_ref[R_WFC:R_WFC + H, :]      # (H, 128), gamma already folded, cols V: zero
    bfc = slab_ref[R_BFC:R_BFC + 1, :]      # (1, 128), beta@W_fc^T + b_fc, cols V: zero

    # Serial GRU recurrence, fully unrolled (T is small & static). The input
    # projection is a pre-computed table lookup: one dynamic row load per (b, t).
    h = jnp.zeros((B, H), dtype=jnp.float32)
    hs = []
    for t in range(T):
        rows = [slab_ref[pl.ds(ids_ref[b * T + t], 1), :] for b in range(B)]
        gi = jnp.concatenate(rows, axis=0)                                # (B, 128)
        gh = jnp.dot(h, whh, preferred_element_type=jnp.float32) + bhn    # (B, 128)
        r = jax.nn.sigmoid(gi[:, 0:H] + gh[:, 0:H])
        z = jax.nn.sigmoid(gi[:, H:2 * H] + gh[:, H:2 * H])
        n = jnp.tanh(gi[:, 2 * H:3 * H] + r * gh[:, 2 * H:3 * H])
        h = n + z * (h - n)                                               # == (1-z)*n + z*h
        hs.append(h)

    # Time-major (t*B + b) hidden states — no per-row reorder needed in-kernel.
    h_all = jnp.concatenate(hs, axis=0)                                   # (T*B, H)

    # LayerNorm (biased variance; gamma/beta already folded into wfc/bfc).
    mu = jnp.mean(h_all, axis=-1, keepdims=True)
    var = jnp.mean((h_all - mu) ** 2, axis=-1, keepdims=True)
    xhat = (h_all - mu) * lax.rsqrt(var + LN_EPS)

    # Single lane-dense (T*B, 128) store; columns V: are zero and sliced off
    # in the wrapper (free reshape/transpose at ~4 KB).
    logits_ref[...] = jnp.dot(xhat, wfc, preferred_element_type=jnp.float32) + bfc
    hfin_ref[0] = h


# ---------------------------------------------------------------------------
# Parameter prep (done once, outside the per-call hot path)
# ---------------------------------------------------------------------------
def prepare_kernel_params(params):
    """Fold & pack all weights into one (144, 128) f32 slab the kernel consumes."""
    emb = params["embedding"].astype(jnp.float32)        # (V, E)
    w_ih_t = params["w_ih"].T.astype(jnp.float32)        # (E, 3H), gate order r, z, n
    w_hh_t = params["w_hh"].T.astype(jnp.float32)        # (H, 3H)
    b_ih = params["b_ih"].astype(jnp.float32)            # (3H,)
    b_hh = params["b_hh"].astype(jnp.float32)            # (3H,)
    gamma = params["ln_w"].astype(jnp.float32)           # (H,)
    beta = params["ln_b"].astype(jnp.float32)            # (H,)
    w_fc_t = params["fc_w"].T.astype(jnp.float32)        # (H, V)
    b_fc = params["fc_b"].astype(jnp.float32)            # (V,)

    V, E = emb.shape
    H = w_hh_t.shape[0]

    # Fold r/z hidden biases into the per-token table; b_hn must stay inside
    # the recurrence (n = tanh(gi_n + r * (gh_n + b_hn))).
    bias_fold = jnp.concatenate([b_ih[:2 * H] + b_hh[:2 * H], b_ih[2 * H:]])
    gi_table = emb @ w_ih_t + bias_fold[None, :]          # (V, 3H)

    # Fold the LayerNorm affine into the output projection.
    wfc_g = gamma[:, None] * w_fc_t                       # (H, V)
    bfc_eff = beta @ w_fc_t + b_fc                        # (V,)

    slab = jnp.zeros((SLAB_ROWS, LANES), jnp.float32)
    slab = slab.at[R_GI:R_GI + V, :3 * H].set(gi_table)
    slab = slab.at[R_WHH:R_WHH + H, :3 * H].set(w_hh_t)
    slab = slab.at[R_WFC:R_WFC + H, :V].set(wfc_g)
    slab = slab.at[R_BHN, 2 * H:3 * H].set(b_hh[2 * H:])
    slab = slab.at[R_BFC, :V].set(bfc_eff)
    return {"slab": slab}


# ---------------------------------------------------------------------------
# Wrapper
# ---------------------------------------------------------------------------
def recurrent_lm_forward(x_tokens, kp):
    """x_tokens: (B, T) int32 token ids. Returns (logits (B,T,V), hidden (1,B,H))."""
    B, T = x_tokens.shape
    slab = kp["slab"]
    ids_flat = x_tokens.reshape(B * T).astype(jnp.int32)   # free row-major flatten (b*T + t)

    cost = pl.CostEstimate(flops=262_144, transcendentals=1_536, bytes_accessed=82_240)

    logits_tm, h_final = pl.pallas_call(
        recurrent_lm_kernel,
        out_shape=(
            jax.ShapeDtypeStruct((T * B, LANES), jnp.float32),
            jax.ShapeDtypeStruct((1, B, HIDDEN), jnp.float32),
        ),
        grid_spec=pltpu.PrefetchScalarGridSpec(
            num_scalar_prefetch=1,
            grid=(1,),
            in_specs=[pl.BlockSpec((SLAB_ROWS, LANES), lambda i, ids: (0, 0))],
            out_specs=(
                pl.BlockSpec((T * B, LANES), lambda i, ids: (0, 0)),
                pl.BlockSpec((1, B, HIDDEN), lambda i, ids: (0, 0, 0)),
            ),
        ),
        compiler_params=pltpu.CompilerParams(dimension_semantics=("arbitrary",)),
        cost_estimate=cost,
    )(ids_flat, slab)

    # Free ~4 KB layout fixup: (T*B, 128) time-major -> (B, T, V) batch-major.
    logits = jnp.transpose(logits_tm.reshape(T, B, LANES), (1, 0, 2))[..., :VOCAB]
    return logits, h_final


# ---------------------------------------------------------------------------
# Pure-JAX reference (for correctness check; uses raw, unfolded parameters)
# ---------------------------------------------------------------------------
def reference_forward(x_tokens, params):
    emb = params["embedding"][x_tokens]                   # (B, T, E)
    B, T, _ = emb.shape
    H = params["w_hh"].shape[1]
    w_ih_t = params["w_ih"].T
    w_hh_t = params["w_hh"].T

    def step(h, x_t):
        gi = x_t @ w_ih_t + params["b_ih"]
        gh = h @ w_hh_t + params["b_hh"]
        r = jax.nn.sigmoid(gi[:, :H] + gh[:, :H])
        z = jax.nn.sigmoid(gi[:, H:2 * H] + gh[:, H:2 * H])
        n = jnp.tanh(gi[:, 2 * H:] + r * gh[:, 2 * H:])
        h_new = (1.0 - z) * n + z * h
        return h_new, h_new

    h0 = jnp.zeros((B, H), jnp.float32)
    h_final, outs = lax.scan(step, h0, jnp.transpose(emb, (1, 0, 2)))
    outs = jnp.transpose(outs, (1, 0, 2))                 # (B, T, H)
    mu = jnp.mean(outs, axis=-1, keepdims=True)
    var = jnp.mean((outs - mu) ** 2, axis=-1, keepdims=True)
    y = (outs - mu) / jnp.sqrt(var + LN_EPS) * params["ln_w"] + params["ln_b"]
    logits = y @ params["fc_w"].T + params["fc_b"]
    return logits, h_final[None]


# ---------------------------------------------------------------------------
# Deterministic parameter init (synthetic, no checkpoint load)
# ---------------------------------------------------------------------------
def init_params(key):
    ks = jax.random.split(key, 8)
    scale = 0.1
    return {
        "embedding": scale * jax.random.normal(ks[0], (VOCAB, EMBED), jnp.float32),
        "w_ih": scale * jax.random.normal(ks[1], (3 * HIDDEN, EMBED), jnp.float32),
        "w_hh": scale * jax.random.normal(ks[2], (3 * HIDDEN, HIDDEN), jnp.float32),
        "b_ih": scale * jax.random.normal(ks[3], (3 * HIDDEN,), jnp.float32),
        "b_hh": scale * jax.random.normal(ks[4], (3 * HIDDEN,), jnp.float32),
        "ln_w": jnp.ones((HIDDEN,), jnp.float32),
        "ln_b": jnp.zeros((HIDDEN,), jnp.float32),
        "fc_w": scale * jax.random.normal(ks[5], (VOCAB, HIDDEN), jnp.float32),
        "fc_b": scale * jax.random.normal(ks[6], (VOCAB,), jnp.float32),
    }


if __name__ == "__main__":
    key = jax.random.PRNGKey(0)
    pkey, xkey = jax.random.split(key)
    params = init_params(pkey)
    kparams = prepare_kernel_params(params)     # one-time weight fold/pack
    x = jax.random.randint(xkey, (BATCH, SEQ), 0, VOCAB, dtype=jnp.int32)

    fwd = jax.jit(recurrent_lm_forward)
    logits, hidden = fwd(x, kparams)
    jax.block_until_ready((logits, hidden))

    ref_logits, ref_hidden = reference_forward(x, params)
    assert logits.shape == (BATCH, SEQ, VOCAB)
    assert hidden.shape == (1, BATCH, HIDDEN)
    assert jnp.allclose(logits, ref_logits, rtol=1e-3, atol=1e-3)
    assert jnp.allclose(hidden, ref_hidden, rtol=1e-3, atol=1e-3)

    print("KERNEL_OK")
</pallas_src>

<mosaic_0001>
module attributes {stable_mosaic.version = 11 : i64} {
  func.func @recurrent_lm_kernel(%arg0: i32, %arg1: memref<16xi32, #tpu.memory_space<smem>>, %arg2: memref<144x128xf32, #tpu.memory_space<vmem>>, %arg3: memref<16x128xf32, #tpu.memory_space<vmem>>, %arg4: memref<1x2x32xf32, #tpu.memory_space<vmem>>) attributes {dimension_semantics = [#tpu.dimension_semantics<arbitrary>], iteration_bounds = array<i64: 1>, scalar_prefetch = 1 : i64, scratch_operands = 0 : i64, tpu.core_type = #tpu.core_type<tc>, window_params = [{pipeline_mode = #tpu.pipeline_mode<synchronous>, transform_indices = @transform_0, window_bounds = array<i64: 144, 128>}, {pipeline_mode = #tpu.pipeline_mode<synchronous>, transform_indices = @transform_1, window_bounds = array<i64: 16, 128>}, {pipeline_mode = #tpu.pipeline_mode<synchronous>, transform_indices = @transform_2, window_bounds = array<i64: 1, 2, 32>}]} {
    %c64 = arith.constant 64 : index
    %c0 = arith.constant 0 : index
    %0 = vector.load %arg2[%c64, %c0] : memref<144x128xf32, #tpu.memory_space<vmem>>, vector<32x128xf32>
    %c128 = arith.constant 128 : index
    %c0_0 = arith.constant 0 : index
    %1 = vector.load %arg2[%c128, %c0_0] : memref<144x128xf32, #tpu.memory_space<vmem>>, vector<1x128xf32>
    %c96 = arith.constant 96 : index
    %c0_1 = arith.constant 0 : index
    %2 = vector.load %arg2[%c96, %c0_1] : memref<144x128xf32, #tpu.memory_space<vmem>>, vector<32x128xf32>
    %c136 = arith.constant 136 : index
    %c0_2 = arith.constant 0 : index
    %3 = vector.load %arg2[%c136, %c0_2] : memref<144x128xf32, #tpu.memory_space<vmem>>, vector<1x128xf32>
    %cst = arith.constant 0.000000e+00 : f32
    %4 = vector.broadcast %cst : f32 to vector<2x32xf32>
    %c0_3 = arith.constant 0 : index
    %5 = memref.load %arg1[%c0_3] : memref<16xi32, #tpu.memory_space<smem>>
    %6 = arith.index_cast %5 : i32 to index
    %c0_4 = arith.constant 0 : index
    %7 = vector.load %arg2[%6, %c0_4] : memref<144x128xf32, #tpu.memory_space<vmem>>, vector<1x128xf32>
    %c8 = arith.constant 8 : index
    %8 = memref.load %arg1[%c8] : memref<16xi32, #tpu.memory_space<smem>>
    %9 = arith.index_cast %8 : i32 to index
    %c0_5 = arith.constant 0 : index
    %10 = vector.load %arg2[%9, %c0_5] : memref<144x128xf32, #tpu.memory_space<vmem>>, vector<1x128xf32>
    %11 = tpu.concatenate %7, %10 in 0 : vector<1x128xf32>, vector<1x128xf32> -> vector<2x128xf32>
    %cst_6 = arith.constant dense<0.000000e+00> : vector<2x128xf32>
    %12 = tpu.matmul %4, %0, %cst_6 {dimension_numbers = #tpu.dot_dimension_numbers<[1], [0], [0], [1], [0, 0, 1, 1], [], []>} : vector<2x32xf32>, vector<32x128xf32>, vector<2x128xf32> -> vector<2x128xf32>
    %13 = vector.broadcast %1 : vector<1x128xf32> to vector<2x128xf32>
    %14 = arith.addf %12, %13 : vector<2x128xf32>
    %15 = vector.extract_strided_slice %11 {offsets = [0, 0], sizes = [2, 32], strides = [1, 1]} : vector<2x128xf32> to vector<2x32xf32>
    %16 = vector.extract_strided_slice %14 {offsets = [0, 0], sizes = [2, 32], strides = [1, 1]} : vector<2x128xf32> to vector<2x32xf32>
    %17 = arith.addf %15, %16 : vector<2x32xf32>
    %18 = arith.negf %17 : vector<2x32xf32>
    %19 = math.exp %18 : vector<2x32xf32>
    %cst_7 = arith.constant 1.000000e+00 : f32
    %20 = vector.broadcast %cst_7 : f32 to vector<2x32xf32>
    %21 = arith.addf %20, %19 : vector<2x32xf32>
    %22 = arith.divf %20, %21 : vector<2x32xf32>
    %23 = vector.extract_strided_slice %11 {offsets = [0, 32], sizes = [2, 32], strides = [1, 1]} : vector<2x128xf32> to vector<2x32xf32>
    %24 = vector.extract_strided_slice %14 {offsets = [0, 32], sizes = [2, 32], strides = [1, 1]} : vector<2x128xf32> to vector<2x32xf32>
    %25 = arith.addf %23, %24 : vector<2x32xf32>
    %26 = arith.negf %25 : vector<2x32xf32>
    %27 = math.exp %26 : vector<2x32xf32>
    %cst_8 = arith.constant 1.000000e+00 : f32
    %28 = vector.broadcast %cst_8 : f32 to vector<2x32xf32>
    %29 = arith.addf %28, %27 : vector<2x32xf32>
    %30 = arith.divf %28, %29 : vector<2x32xf32>
    %31 = vector.extract_strided_slice %11 {offsets = [0, 64], sizes = [2, 32], strides = [1, 1]} : vector<2x128xf32> to vector<2x32xf32>
    %32 = vector.extract_strided_slice %14 {offsets = [0, 64], sizes = [2, 32], strides = [1, 1]} : vector<2x128xf32> to vector<2x32xf32>
    %33 = arith.mulf %22, %32 : vector<2x32xf32>
    %34 = arith.addf %31, %33 : vector<2x32xf32>
    %35 = math.tanh %34 : vector<2x32xf32>
    %36 = arith.subf %4, %35 : vector<2x32xf32>
    %37 = arith.mulf %30, %36 : vector<2x32xf32>
    %38 = arith.addf %35, %37 : vector<2x32xf32>
    %c1 = arith.constant 1 : index
    %39 = memref.load %arg1[%c1] : memref<16xi32, #tpu.memory_space<smem>>
    %40 = arith.index_cast %39 : i32 to index
    %c0_9 = arith.constant 0 : index
    %41 = vector.load %arg2[%40, %c0_9] : memref<144x128xf32, #tpu.memory_space<vmem>>, vector<1x128xf32>
    %c9 = arith.constant 9 : index
    %42 = memref.load %arg1[%c9] : memref<16xi32, #tpu.memory_space<smem>>
    %43 = arith.index_cast %42 : i32 to index
    %c0_10 = arith.constant 0 : index
    %44 = vector.load %arg2[%43, %c0_10] : memref<144x128xf32, #tpu.memory_space<vmem>>, vector<1x128xf32>
    %45 = tpu.concatenate %41, %44 in 0 : vector<1x128xf32>, vector<1x128xf32> -> vector<2x128xf32>
    %cst_11 = arith.constant dense<0.000000e+00> : vector<2x128xf32>
    %46 = tpu.matmul %38, %0, %cst_11 {dimension_numbers = #tpu.dot_dimension_numbers<[1], [0], [0], [1], [0, 0, 1, 1], [], []>} : vector<2x32xf32>, vector<32x128xf32>, vector<2x128xf32> -> vector<2x128xf32>
    %47 = vector.broadcast %1 : vector<1x128xf32> to vector<2x128xf32>
    %48 = arith.addf %46, %47 : vector<2x128xf32>
    %49 = vector.extract_strided_slice %45 {offsets = [0, 0], sizes = [2, 32], strides = [1, 1]} : vector<2x128xf32> to vector<2x32xf32>
    %50 = vector.extract_strided_slice %48 {offsets = [0, 0], sizes = [2, 32], strides = [1, 1]} : vector<2x128xf32> to vector<2x32xf32>
    %51 = arith.addf %49, %50 : vector<2x32xf32>
    %52 = arith.negf %51 : vector<2x32xf32>
    %53 = math.exp %52 : vector<2x32xf32>
    %cst_12 = arith.constant 1.000000e+00 : f32
    %54 = vector.broadcast %cst_12 : f32 to vector<2x32xf32>
    %55 = arith.addf %54, %53 : vector<2x32xf32>
    %56 = arith.divf %54, %55 : vector<2x32xf32>
    %57 = vector.extract_strided_slice %45 {offsets = [0, 32], sizes = [2, 32], strides = [1, 1]} : vector<2x128xf32> to vector<2x32xf32>
    %58 = vector.extract_strided_slice %48 {offsets = [0, 32], sizes = [2, 32], strides = [1, 1]} : vector<2x128xf32> to vector<2x32xf32>
    %59 = arith.addf %57, %58 : vector<2x32xf32>
    %60 = arith.negf %59 : vector<2x32xf32>
    %61 = math.exp %60 : vector<2x32xf32>
    %cst_13 = arith.constant 1.000000e+00 : f32
    %62 = vector.broadcast %cst_13 : f32 to vector<2x32xf32>
    %63 = arith.addf %62, %61 : vector<2x32xf32>
    %64 = arith.divf %62, %63 : vector<2x32xf32>
    %65 = vector.extract_strided_slice %45 {offsets = [0, 64], sizes = [2, 32], strides = [1, 1]} : vector<2x128xf32> to vector<2x32xf32>
    %66 = vector.extract_strided_slice %48 {offsets = [0, 64], sizes = [2, 32], strides = [1, 1]} : vector<2x128xf32> to vector<2x32xf32>
    %67 = arith.mulf %56, %66 : vector<2x32xf32>
    %68 = arith.addf %65, %67 : vector<2x32xf32>
    %69 = math.tanh %68 : vector<2x32xf32>
    %70 = arith.subf %38, %69 : vector<2x32xf32>
    %71 = arith.mulf %64, %70 : vector<2x32xf32>
    %72 = arith.addf %69, %71 : vector<2x32xf32>
    %c2 = arith.constant 2 : index
    %73 = memref.load %arg1[%c2] : memref<16xi32, #tpu.memory_space<smem>>
    %74 = arith.index_cast %73 : i32 to index
    %c0_14 = arith.constant 0 : index
    %75 = vector.load %arg2[%74, %c0_14] : memref<144x128xf32, #tpu.memory_space<vmem>>, vector<1x128xf32>
    %c10 = arith.constant 10 : index
    %76 = memref.load %arg1[%c10] : memref<16xi32, #tpu.memory_space<smem>>
    %77 = arith.index_cast %76 : i32 to index
    %c0_15 = arith.constant 0 : index
    %78 = vector.load %arg2[%77, %c0_15] : memref<144x128xf32, #tpu.memory_space<vmem>>, vector<1x128xf32>
    %79 = tpu.concatenate %75, %78 in 0 : vector<1x128xf32>, vector<1x128xf32> -> vector<2x128xf32>
    %cst_16 = arith.constant dense<0.000000e+00> : vector<2x128xf32>
    %80 = tpu.matmul %72, %0, %cst_16 {dimension_numbers = #tpu.dot_dimension_numbers<[1], [0], [0], [1], [0, 0, 1, 1], [], []>} : vector<2x32xf32>, vector<32x128xf32>, vector<2x128xf32> -> vector<2x128xf32>
    %81 = vector.broadcast %1 : vector<1x128xf32> to vector<2x128xf32>
    %82 = arith.addf %80, %81 : vector<2x128xf32>
    %83 = vector.extract_strided_slice %79 {offsets = [0, 0], sizes = [2, 32], strides = [1, 1]} : vector<2x128xf32> to vector<2x32xf32>
    %84 = vector.extract_strided_slice %82 {offsets = [0, 0], sizes = [2, 32], strides = [1, 1]} : vector<2x128xf32> to vector<2x32xf32>
    %85 = arith.addf %83, %84 : vector<2x32xf32>
    %86 = arith.negf %85 : vector<2x32xf32>
    %87 = math.exp %86 : vector<2x32xf32>
    %cst_17 = arith.constant 1.000000e+00 : f32
    %88 = vector.broadcast %cst_17 : f32 to vector<2x32xf32>
    %89 = arith.addf %88, %87 : vector<2x32xf32>
    %90 = arith.divf %88, %89 : vector<2x32xf32>
    %91 = vector.extract_strided_slice %79 {offsets = [0, 32], sizes = [2, 32], strides = [1, 1]} : vector<2x128xf32> to vector<2x32xf32>
    %92 = vector.extract_strided_slice %82 {offsets = [0, 32], sizes = [2, 32], strides = [1, 1]} : vector<2x128xf32> to vector<2x32xf32>
    %93 = arith.addf %91, %92 : vector<2x32xf32>
    %94 = arith.negf %93 : vector<2x32xf32>
    %95 = math.exp %94 : vector<2x32xf32>
    %cst_18 = arith.constant 1.000000e+00 : f32
    %96 = vector.broadcast %cst_18 : f32 to vector<2x32xf32>
    %97 = arith.addf %96, %95 : vector<2x32xf32>
    %98 = arith.divf %96, %97 : vector<2x32xf32>
    %99 = vector.extract_strided_slice %79 {offsets = [0, 64], sizes = [2, 32], strides = [1, 1]} : vector<2x128xf32> to vector<2x32xf32>
    %100 = vector.extract_strided_slice %82 {offsets = [0, 64], sizes = [2, 32], strides = [1, 1]} : vector<2x128xf32> to vector<2x32xf32>
    %101 = arith.mulf %90, %100 : vector<2x32xf32>
    %102 = arith.addf %99, %101 : vector<2x32xf32>
    %103 = math.tanh %102 : vector<2x32xf32>
    %104 = arith.subf %72, %103 : vector<2x32xf32>
    %105 = arith.mulf %98, %104 : vector<2x32xf32>
    %106 = arith.addf %103, %105 : vector<2x32xf32>
    %c3 = arith.constant 3 : index
    %107 = memref.load %arg1[%c3] : memref<16xi32, #tpu.memory_space<smem>>
    %108 = arith.index_cast %107 : i32 to index
    %c0_19 = arith.constant 0 : index
    %109 = vector.load %arg2[%108, %c0_19] : memref<144x128xf32, #tpu.memory_space<vmem>>, vector<1x128xf32>
    %c11 = arith.constant 11 : index
    %110 = memref.load %arg1[%c11] : memref<16xi32, #tpu.memory_space<smem>>
    %111 = arith.index_cast %110 : i32 to index
    %c0_20 = arith.constant 0 : index
    %112 = vector.load %arg2[%111, %c0_20] : memref<144x128xf32, #tpu.memory_space<vmem>>, vector<1x128xf32>
    %113 = tpu.concatenate %109, %112 in 0 : vector<1x128xf32>, vector<1x128xf32> -> vector<2x128xf32>
    %cst_21 = arith.constant dense<0.000000e+00> : vector<2x128xf32>
    %114 = tpu.matmul %106, %0, %cst_21 {dimension_numbers = #tpu.dot_dimension_numbers<[1], [0], [0], [1], [0, 0, 1, 1], [], []>} : vector<2x32xf32>, vector<32x128xf32>, vector<2x128xf32> -> vector<2x128xf32>
    %115 = vector.broadcast %1 : vector<1x128xf32> to vector<2x128xf32>
    %116 = arith.addf %114, %115 : vector<2x128xf32>
    %117 = vector.extract_strided_slice %113 {offsets = [0, 0], sizes = [2, 32], strides = [1, 1]} : vector<2x128xf32> to vector<2x32xf32>
    %118 = vector.extract_strided_slice %116 {offsets = [0, 0], sizes = [2, 32], strides = [1, 1]} : vector<2x128xf32> to vector<2x32xf32>
    %119 = arith.addf %117, %118 : vector<2x32xf32>
    %120 = arith.negf %119 : vector<2x32xf32>
    %121 = math.exp %120 : vector<2x32xf32>
    %cst_22 = arith.constant 1.000000e+00 : f32
    %122 = vector.broadcast %cst_22 : f32 to vector<2x32xf32>
    %123 = arith.addf %122, %121 : vector<2x32xf32>
    %124 = arith.divf %122, %123 : vector<2x32xf32>
    %125 = vector.extract_strided_slice %113 {offsets = [0, 32], sizes = [2, 32], strides = [1, 1]} : vector<2x128xf32> to vector<2x32xf32>
    %126 = vector.extract_strided_slice %116 {offsets = [0, 32], sizes = [2, 32], strides = [1, 1]} : vector<2x128xf32> to vector<2x32xf32>
    %127 = arith.addf %125, %126 : vector<2x32xf32>
    %128 = arith.negf %127 : vector<2x32xf32>
    %129 = math.exp %128 : vector<2x32xf32>
    %cst_23 = arith.constant 1.000000e+00 : f32
    %130 = vector.broadcast %cst_23 : f32 to vector<2x32xf32>
    %131 = arith.addf %130, %129 : vector<2x32xf32>
    %132 = arith.divf %130, %131 : vector<2x32xf32>
    %133 = vector.extract_strided_slice %113 {offsets = [0, 64], sizes = [2, 32], strides = [1, 1]} : vector<2x128xf32> to vector<2x32xf32>
    %134 = vector.extract_strided_slice %116 {offsets = [0, 64], sizes = [2, 32], strides = [1, 1]} : vector<2x128xf32> to vector<2x32xf32>
    %135 = arith.mulf %124, %134 : vector<2x32xf32>
    %136 = arith.addf %133, %135 : vector<2x32xf32>
    %137 = math.tanh %136 : vector<2x32xf32>
    %138 = arith.subf %106, %137 : vector<2x32xf32>
    %139 = arith.mulf %132, %138 : vector<2x32xf32>
    %140 = arith.addf %137, %139 : vector<2x32xf32>
    %c4 = arith.constant 4 : index
    %141 = memref.load %arg1[%c4] : memref<16xi32, #tpu.memory_space<smem>>
    %142 = arith.index_cast %141 : i32 to index
    %c0_24 = arith.constant 0 : index
    %143 = vector.load %arg2[%142, %c0_24] : memref<144x128xf32, #tpu.memory_space<vmem>>, vector<1x128xf32>
    %c12 = arith.constant 12 : index
    %144 = memref.load %arg1[%c12] : memref<16xi32, #tpu.memory_space<smem>>
    %145 = arith.index_cast %144 : i32 to index
    %c0_25 = arith.constant 0 : index
    %146 = vector.load %arg2[%145, %c0_25] : memref<144x128xf32, #tpu.memory_space<vmem>>, vector<1x128xf32>
    %147 = tpu.concatenate %143, %146 in 0 : vector<1x128xf32>, vector<1x128xf32> -> vector<2x128xf32>
    %cst_26 = arith.constant dense<0.000000e+00> : vector<2x128xf32>
    %148 = tpu.matmul %140, %0, %cst_26 {dimension_numbers = #tpu.dot_dimension_numbers<[1], [0], [0], [1], [0, 0, 1, 1], [], []>} : vector<2x32xf32>, vector<32x128xf32>, vector<2x128xf32> -> vector<2x128xf32>
    %149 = vector.broadcast %1 : vector<1x128xf32> to vector<2x128xf32>
    %150 = arith.addf %148, %149 : vector<2x128xf32>
    %151 = vector.extract_strided_slice %147 {offsets = [0, 0], sizes = [2, 32], strides = [1, 1]} : vector<2x128xf32> to vector<2x32xf32>
    %152 = vector.extract_strided_slice %150 {offsets = [0, 0], sizes = [2, 32], strides = [1, 1]} : vector<2x128xf32> to vector<2x32xf32>
    %153 = arith.addf %151, %152 : vector<2x32xf32>
    %154 = arith.negf %153 : vector<2x32xf32>
    %155 = math.exp %154 : vector<2x32xf32>
    %cst_27 = arith.constant 1.000000e+00 : f32
    %156 = vector.broadcast %cst_27 : f32 to vector<2x32xf32>
    %157 = arith.addf %156, %155 : vector<2x32xf32>
    %158 = arith.divf %156, %157 : vector<2x32xf32>
    %159 = vector.extract_strided_slice %147 {offsets = [0, 32], sizes = [2, 32], strides = [1, 1]} : vector<2x128xf32> to vector<2x32xf32>
    %160 = vector.extract_strided_slice %150 {offsets = [0, 32], sizes = [2, 32], strides = [1, 1]} : vector<2x128xf32> to vector<2x32xf32>
    %161 = arith.addf %159, %160 : vector<2x32xf32>
    %162 = arith.negf %161 : vector<2x32xf32>
    %163 = math.exp %162 : vector<2x32xf32>
    %cst_28 = arith.constant 1.000000e+00 : f32
    %164 = vector.broadcast %cst_28 : f32 to vector<2x32xf32>
    %165 = arith.addf %164, %163 : vector<2x32xf32>
    %166 = arith.divf %164, %165 : vector<2x32xf32>
    %167 = vector.extract_strided_slice %147 {offsets = [0, 64], sizes = [2, 32], strides = [1, 1]} : vector<2x128xf32> to vector<2x32xf32>
    %168 = vector.extract_strided_slice %150 {offsets = [0, 64], sizes = [2, 32], strides = [1, 1]} : vector<2x128xf32> to vector<2x32xf32>
    %169 = arith.mulf %158, %168 : vector<2x32xf32>
    %170 = arith.addf %167, %169 : vector<2x32xf32>
    %171 = math.tanh %170 : vector<2x32xf32>
    %172 = arith.subf %140, %171 : vector<2x32xf32>
    %173 = arith.mulf %166, %172 : vector<2x32xf32>
    %174 = arith.addf %171, %173 : vector<2x32xf32>
    %c5 = arith.constant 5 : index
    %175 = memref.load %arg1[%c5] : memref<16xi32, #tpu.memory_space<smem>>
    %176 = arith.index_cast %175 : i32 to index
    %c0_29 = arith.constant 0 : index
    %177 = vector.load %arg2[%176, %c0_29] : memref<144x128xf32, #tpu.memory_space<vmem>>, vector<1x128xf32>
    %c13 = arith.constant 13 : index
    %178 = memref.load %arg1[%c13] : memref<16xi32, #tpu.memory_space<smem>>
    %179 = arith.index_cast %178 : i32 to index
    %c0_30 = arith.constant 0 : index
    %180 = vector.load %arg2[%179, %c0_30] : memref<144x128xf32, #tpu.memory_space<vmem>>, vector<1x128xf32>
    %181 = tpu.concatenate %177, %180 in 0 : vector<1x128xf32>, vector<1x128xf32> -> vector<2x128xf32>
    %cst_31 = arith.constant dense<0.000000e+00> : vector<2x128xf32>
    %182 = tpu.matmul %174, %0, %cst_31 {dimension_numbers = #tpu.dot_dimension_numbers<[1], [0], [0], [1], [0, 0, 1, 1], [], []>} : vector<2x32xf32>, vector<32x128xf32>, vector<2x128xf32> -> vector<2x128xf32>
    %183 = vector.broadcast %1 : vector<1x128xf32> to vector<2x128xf32>
    %184 = arith.addf %182, %183 : vector<2x128xf32>
    %185 = vector.extract_strided_slice %181 {offsets = [0, 0], sizes = [2, 32], strides = [1, 1]} : vector<2x128xf32> to vector<2x32xf32>
    %186 = vector.extract_strided_slice %184 {offsets = [0, 0], sizes = [2, 32], strides = [1, 1]} : vector<2x128xf32> to vector<2x32xf32>
    %187 = arith.addf %185, %186 : vector<2x32xf32>
    %188 = arith.negf %187 : vector<2x32xf32>
    %189 = math.exp %188 : vector<2x32xf32>
    %cst_32 = arith.constant 1.000000e+00 : f32
    %190 = vector.broadcast %cst_32 : f32 to vector<2x32xf32>
    %191 = arith.addf %190, %189 : vector<2x32xf32>
    %192 = arith.divf %190, %191 : vector<2x32xf32>
    %193 = vector.extract_strided_slice %181 {offsets = [0, 32], sizes = [2, 32], strides = [1, 1]} : vector<2x128xf32> to vector<2x32xf32>
    %194 = vector.extract_strided_slice %184 {offsets = [0, 32], sizes = [2, 32], strides = [1, 1]} : vector<2x128xf32> to vector<2x32xf32>
    %195 = arith.addf %193, %194 : vector<2x32xf32>
    %196 = arith.negf %195 : vector<2x32xf32>
    %197 = math.exp %196 : vector<2x32xf32>
    %cst_33 = arith.constant 1.000000e+00 : f32
    %198 = vector.broadcast %cst_33 : f32 to vector<2x32xf32>
    %199 = arith.addf %198, %197 : vector<2x32xf32>
    %200 = arith.divf %198, %199 : vector<2x32xf32>
    %201 = vector.extract_strided_slice %181 {offsets = [0, 64], sizes = [2, 32], strides = [1, 1]} : vector<2x128xf32> to vector<2x32xf32>
    %202 = vector.extract_strided_slice %184 {offsets = [0, 64], sizes = [2, 32], strides = [1, 1]} : vector<2x128xf32> to vector<2x32xf32>
    %203 = arith.mulf %192, %202 : vector<2x32xf32>
    %204 = arith.addf %201, %203 : vector<2x32xf32>
    %205 = math.tanh %204 : vector<2x32xf32>
    %206 = arith.subf %174, %205 : vector<2x32xf32>
    %207 = arith.mulf %200, %206 : vector<2x32xf32>
    %208 = arith.addf %205, %207 : vector<2x32xf32>
    %c6 = arith.constant 6 : index
    %209 = memref.load %arg1[%c6] : memref<16xi32, #tpu.memory_space<smem>>
    %210 = arith.index_cast %209 : i32 to index
    %c0_34 = arith.constant 0 : index
    %211 = vector.load %arg2[%210, %c0_34] : memref<144x128xf32, #tpu.memory_space<vmem>>, vector<1x128xf32>
    %c14 = arith.constant 14 : index
    %212 = memref.load %arg1[%c14] : memref<16xi32, #tpu.memory_space<smem>>
    %213 = arith.index_cast %212 : i32 to index
    %c0_35 = arith.constant 0 : index
    %214 = vector.load %arg2[%213, %c0_35] : memref<144x128xf32, #tpu.memory_space<vmem>>, vector<1x128xf32>
    %215 = tpu.concatenate %211, %214 in 0 : vector<1x128xf32>, vector<1x128xf32> -> vector<2x128xf32>
    %cst_36 = arith.constant dense<0.000000e+00> : vector<2x128xf32>
    %216 = tpu.matmul %208, %0, %cst_36 {dimension_numbers = #tpu.dot_dimension_numbers<[1], [0], [0], [1], [0, 0, 1, 1], [], []>} : vector<2x32xf32>, vector<32x128xf32>, vector<2x128xf32> -> vector<2x128xf32>
    %217 = vector.broadcast %1 : vector<1x128xf32> to vector<2x128xf32>
    %218 = arith.addf %216, %217 : vector<2x128xf32>
    %219 = vector.extract_strided_slice %215 {offsets = [0, 0], sizes = [2, 32], strides = [1, 1]} : vector<2x128xf32> to vector<2x32xf32>
    %220 = vector.extract_strided_slice %218 {offsets = [0, 0], sizes = [2, 32], strides = [1, 1]} : vector<2x128xf32> to vector<2x32xf32>
    %221 = arith.addf %219, %220 : vector<2x32xf32>
    %222 = arith.negf %221 : vector<2x32xf32>
    %223 = math.exp %222 : vector<2x32xf32>
    %cst_37 = arith.constant 1.000000e+00 : f32
    %224 = vector.broadcast %cst_37 : f32 to vector<2x32xf32>
    %225 = arith.addf %224, %223 : vector<2x32xf32>
    %226 = arith.divf %224, %225 : vector<2x32xf32>
    %227 = vector.extract_strided_slice %215 {offsets = [0, 32], sizes = [2, 32], strides = [1, 1]} : vector<2x128xf32> to vector<2x32xf32>
    %228 = vector.extract_strided_slice %218 {offsets = [0, 32], sizes = [2, 32], strides = [1, 1]} : vector<2x128xf32> to vector<2x32xf32>
    %229 = arith.addf %227, %228 : vector<2x32xf32>
    %230 = arith.negf %229 : vector<2x32xf32>
    %231 = math.exp %230 : vector<2x32xf32>
    %cst_38 = arith.constant 1.000000e+00 : f32
    %232 = vector.broadcast %cst_38 : f32 to vector<2x32xf32>
    %233 = arith.addf %232, %231 : vector<2x32xf32>
    %234 = arith.divf %232, %233 : vector<2x32xf32>
    %235 = vector.extract_strided_slice %215 {offsets = [0, 64], sizes = [2, 32], strides = [1, 1]} : vector<2x128xf32> to vector<2x32xf32>
    %236 = vector.extract_strided_slice %218 {offsets = [0, 64], sizes = [2, 32], strides = [1, 1]} : vector<2x128xf32> to vector<2x32xf32>
    %237 = arith.mulf %226, %236 : vector<2x32xf32>
    %238 = arith.addf %235, %237 : vector<2x32xf32>
    %239 = math.tanh %238 : vector<2x32xf32>
    %240 = arith.subf %208, %239 : vector<2x32xf32>
    %241 = arith.mulf %234, %240 : vector<2x32xf32>
    %242 = arith.addf %239, %241 : vector<2x32xf32>
    %c7 = arith.constant 7 : index
    %243 = memref.load %arg1[%c7] : memref<16xi32, #tpu.memory_space<smem>>
    %244 = arith.index_cast %243 : i32 to index
    %c0_39 = arith.constant 0 : index
    %245 = vector.load %arg2[%244, %c0_39] : memref<144x128xf32, #tpu.memory_space<vmem>>, vector<1x128xf32>
    %c15 = arith.constant 15 : index
    %246 = memref.load %arg1[%c15] : memref<16xi32, #tpu.memory_space<smem>>
    %247 = arith.index_cast %246 : i32 to index
    %c0_40 = arith.constant 0 : index
    %248 = vector.load %arg2[%247, %c0_40] : memref<144x128xf32, #tpu.memory_space<vmem>>, vector<1x128xf32>
    %249 = tpu.concatenate %245, %248 in 0 : vector<1x128xf32>, vector<1x128xf32> -> vector<2x128xf32>
    %cst_41 = arith.constant dense<0.000000e+00> : vector<2x128xf32>
    %250 = tpu.matmul %242, %0, %cst_41 {dimension_numbers = #tpu.dot_dimension_numbers<[1], [0], [0], [1], [0, 0, 1, 1], [], []>} : vector<2x32xf32>, vector<32x128xf32>, vector<2x128xf32> -> vector<2x128xf32>
    %251 = vector.broadcast %1 : vector<1x128xf32> to vector<2x128xf32>
    %252 = arith.addf %250, %251 : vector<2x128xf32>
    %253 = vector.extract_strided_slice %249 {offsets = [0, 0], sizes = [2, 32], strides = [1, 1]} : vector<2x128xf32> to vector<2x32xf32>
    %254 = vector.extract_strided_slice %252 {offsets = [0, 0], sizes = [2, 32], strides = [1, 1]} : vector<2x128xf32> to vector<2x32xf32>
    %255 = arith.addf %253, %254 : vector<2x32xf32>
    %256 = arith.negf %255 : vector<2x32xf32>
    %257 = math.exp %256 : vector<2x32xf32>
    %cst_42 = arith.constant 1.000000e+00 : f32
    %258 = vector.broadcast %cst_42 : f32 to vector<2x32xf32>
    %259 = arith.addf %258, %257 : vector<2x32xf32>
    %260 = arith.divf %258, %259 : vector<2x32xf32>
    %261 = vector.extract_strided_slice %249 {offsets = [0, 32], sizes = [2, 32], strides = [1, 1]} : vector<2x128xf32> to vector<2x32xf32>
    %262 = vector.extract_strided_slice %252 {offsets = [0, 32], sizes = [2, 32], strides = [1, 1]} : vector<2x128xf32> to vector<2x32xf32>
    %263 = arith.addf %261, %262 : vector<2x32xf32>
    %264 = arith.negf %263 : vector<2x32xf32>
    %265 = math.exp %264 : vector<2x32xf32>
    %cst_43 = arith.constant 1.000000e+00 : f32
    %266 = vector.broadcast %cst_43 : f32 to vector<2x32xf32>
    %267 = arith.addf %266, %265 : vector<2x32xf32>
    %268 = arith.divf %266, %267 : vector<2x32xf32>
    %269 = vector.extract_strided_slice %249 {offsets = [0, 64], sizes = [2, 32], strides = [1, 1]} : vector<2x128xf32> to vector<2x32xf32>
    %270 = vector.extract_strided_slice %252 {offsets = [0, 64], sizes = [2, 32], strides = [1, 1]} : vector<2x128xf32> to vector<2x32xf32>
    %271 = arith.mulf %260, %270 : vector<2x32xf32>
    %272 = arith.addf %269, %271 : vector<2x32xf32>
    %273 = math.tanh %272 : vector<2x32xf32>
    %274 = arith.subf %242, %273 : vector<2x32xf32>
    %275 = arith.mulf %268, %274 : vector<2x32xf32>
    %276 = arith.addf %273, %275 : vector<2x32xf32>
    %277 = tpu.concatenate %38, %72, %106, %140, %174, %208, %242, %276 in 0 : vector<2x32xf32>, vector<2x32xf32>, vector<2x32xf32>, vector<2x32xf32>, vector<2x32xf32>, vector<2x32xf32>, vector<2x32xf32>, vector<2x32xf32> -> vector<16x32xf32>
    %cst_44 = arith.constant dense<0.000000e+00> : vector<16xf32>
    %278 = vector.multi_reduction <add>, %277, %cst_44 [1] : vector<16x32xf32> to vector<16xf32>
    %279 = vector.shape_cast %278 : vector<16xf32> to vector<16x1xf32>
    %cst_45 = arith.constant 3.200000e+01 : f32
    %280 = vector.broadcast %cst_45 : f32 to vector<16x1xf32>
    %281 = arith.divf %279, %280 : vector<16x1xf32>
    %282 = vector.broadcast %281 : vector<16x1xf32> to vector<16x32xf32>
    %283 = arith.subf %277, %282 : vector<16x32xf32>
    %284 = arith.mulf %283, %283 : vector<16x32xf32>
    %cst_46 = arith.constant dense<0.000000e+00> : vector<16xf32>
    %285 = vector.multi_reduction <add>, %284, %cst_46 [1] : vector<16x32xf32> to vector<16xf32>
    %286 = vector.shape_cast %285 : vector<16xf32> to vector<16x1xf32>
    %cst_47 = arith.constant 3.200000e+01 : f32
    %287 = vector.broadcast %cst_47 : f32 to vector<16x1xf32>
    %288 = arith.divf %286, %287 : vector<16x1xf32>
    %289 = vector.broadcast %281 : vector<16x1xf32> to vector<16x32xf32>
    %290 = arith.subf %277, %289 : vector<16x32xf32>
    %cst_48 = arith.constant 9.99999974E-6 : f32
    %291 = vector.broadcast %cst_48 : f32 to vector<16x1xf32>
    %292 = arith.addf %288, %291 : vector<16x1xf32>
    %293 = math.rsqrt %292 : vector<16x1xf32>
    %294 = vector.broadcast %293 : vector<16x1xf32> to vector<16x32xf32>
    %295 = arith.mulf %290, %294 : vector<16x32xf32>
    %cst_49 = arith.constant dense<0.000000e+00> : vector<16x128xf32>
    %296 = tpu.matmul %295, %2, %cst_49 {dimension_numbers = #tpu.dot_dimension_numbers<[1], [0], [0], [1], [0, 0, 1, 1], [], []>} : vector<16x32xf32>, vector<32x128xf32>, vector<16x128xf32> -> vector<16x128xf32>
    %297 = vector.broadcast %3 : vector<1x128xf32> to vector<16x128xf32>
    %298 = arith.addf %296, %297 : vector<16x128xf32>
    %c0_50 = arith.constant 0 : index
    %c0_51 = arith.constant 0 : index
    %299 = vector.load %arg3[%c0_50, %c0_51] : memref<16x128xf32, #tpu.memory_space<vmem>>, vector<16x128xf32>
    tpu.vector_store %arg3[%c0_50, %c0_51], %298 {strides = array<i32>} : memref<16x128xf32, #tpu.memory_space<vmem>>, vector<16x128xf32>,
    %c0_52 = arith.constant 0 : index
    %c0_53 = arith.constant 0 : index
    %c0_54 = arith.constant 0 : index
    %300 = vector.load %arg4[%c0_52, %c0_53, %c0_54] : memref<1x2x32xf32, #tpu.memory_space<vmem>>, vector<1x2x32xf32>
    %301 = vector.shape_cast %300 : vector<1x2x32xf32> to vector<2x32xf32>
    %302 = vector.shape_cast %276 : vector<2x32xf32> to vector<1x2x32xf32>
    tpu.vector_store %arg4[%c0_52, %c0_53, %c0_54], %302 {strides = array<i32>} : memref<1x2x32xf32, #tpu.memory_space<vmem>>, vector<1x2x32xf32>,
    return
  }
  func.func @transform_0(%arg0: i32, %arg1: memref<16xi32, #tpu.memory_space<smem>>) -> (i32, i32) {
    %c0_i32 = arith.constant 0 : i32
    %c0_i32_0 = arith.constant 0 : i32
    %c0_i32_1 = arith.constant 0 : i32
    return %c0_i32, %c0_i32_0 : i32, i32
  }
  func.func @transform_1(%arg0: i32, %arg1: memref<16xi32, #tpu.memory_space<smem>>) -> (i32, i32) {
    %c0_i32 = arith.constant 0 : i32
    %c0_i32_0 = arith.constant 0 : i32
    %c0_i32_1 = arith.constant 0 : i32
    return %c0_i32, %c0_i32_0 : i32, i32
  }
  func.func @transform_2(%arg0: i32, %arg1: memref<16xi32, #tpu.memory_space<smem>>) -> (i32, i32, i32) {
    %c0_i32 = arith.constant 0 : i32
    %c0_i32_0 = arith.constant 0 : i32
    %c0_i32_1 = arith.constant 0 : i32
    %c0_i32_2 = arith.constant 0 : i32
    return %c0_i32, %c0_i32_0, %c0_i32_1 : i32, i32, i32
  }
}

</mosaic_0001>

<bundles_post_ra>
// kernel: recurrent_lm_forward.1
= control target key start
LH: loop header
LB: loop body
LE: loop exit
PB: predicated region body
PF: predicated region fallthrough
CT: control target
= control target key end

     0   :  { %s994_s15 = smov [#allocation3]   ;;  %s1157_s0 = inlined_call_operand.vmem [shape: s32[16], index: 0, kind: input, shape index: {}]   ;;  %s1158_s1 = inlined_call_operand.hbm [shape: f32[144,128], index: 1, kind: input, shape index: {}]   ;;  %s1159_s2 = inlined_call_operand.vmem [shape: f32[16,128], index: 2, kind: output, shape index: {0}]   ;;  %s1160_s3 = inlined_call_operand.hbm [shape: f32[1,2,32], index: 3, kind: output, shape index: {1}]  }
   0x1   :  { %s10_s14 = sshll.u32 %s1157_s0, 4  ;;  %s11_s14 = int_to_ptr.vmem [resolvable:$true] %s10_s14 }
   0x2   :  { %13 = dma.vmem_to_smem %s11_s14, 16, %s994_s15, [#allocation2] }
   0x3   :  { %988 = dma.done.wait [#allocation2], 16 }
   0x4   :  { %989 = vsyncadd [#allocation2], 4294967280 }
   0x5   :  { %16 = sfence }
   0x6   :  { %17 = vsyncpa [#allocation5], 0 }
   0x7   :  { %18 = vsyncpa [#allocation6], 0  ;;  %s23_s18 = sshll.u32 %s1158_s1, 4  ;;  %s995_s19 = smov [#allocation4]   ;;  %s24_s18 = int_to_ptr.hbm [resolvable:$true] %s23_s18 }
   0x8   :  { %s25_s20 = sshll.u32 %s995_s19, 4  ;;  %s996_s21 = smov 128   ;;  %s26_s20 = int_to_ptr.vmem [resolvable:$true] %s25_s20 }
   0x9   :  { %s997_s22 = smov 8  }
   0xa   :  { %31 = dma.hbm_to_vmem [thread:$0]  %s24_s18, 2304, %s26_s20, [#allocation5], %s996_s21, %s996_s21, %s997_s22  }
   0xb   :  { %990 = dma.done.wait [#allocation5], 2304  }
   0xc   :  { %991 = vsyncadd [#allocation5], 4294964992  ;;  %v39_v0 = vld [vmem:[#allocation4 + $0x58] sm:$0xff]  ;;  %v38_v1 = vld [vmem:[#allocation4 + $0x50] sm:$0xff]  ;;  %v998_v4 = vmov 0.0   ;;  %s999_s0 = smov 64  }
   0xd   :  { %74 = vmatpush.msra.mxu1 %v39_v0  ;;  %228 = vmatpush.msra.mxu2 %v39_v0  ;;  %v37_v2 = vld [vmem:[#allocation4 + $0x48] sm:$0xff]  ;;  %v36_v3 = vld [vmem:[#allocation4 + $0x40] sm:$0xff]  ;;  %s830_s1 = sld [smem:[#allocation3 + $0x8]]  ;;  %vm55_vm0 = vcmask 1040384   ;;  %s1000_s26 = smov 96   ;;  %vm58_vm5 = vcmask 261120  }
   0xe   :  { %305 = vmatpush.msra.mxu3 %v39_v0  ;;  %382 = vmatpush.msra.mxu0 %v39_v0  ;;  %v1030_v5 = vld [vmem:[#allocation4 + $0x80] ss:$0 sm:$0xff]  ;;  %s46_s23 = sld [smem:[#allocation3]]  ;;  %s1001_s27 = smov 32  }
   0xf   :  { %75 = vmatpush.msra.mxu1 %v38_v1  ;;  %229 = vmatpush.msra.mxu2 %v38_v1  ;;  %s833_s28 = sld [smem:[#allocation3 + $0x9]] }
  0x10   :  { %306 = vmatpush.msra.mxu3 %v38_v1  ;;  %383 = vmatpush.msra.mxu0 %v38_v1  ;;  %s832_s29 = sld [smem:[#allocation3 + $0x1]] }
  0x11   :  { %76 = vmatpush.msra.mxu1 %v37_v2  ;;  %230 = vmatpush.msra.mxu2 %v37_v2  ;;  %s837_s5 = sld [smem:[#allocation3 + $0xa]] }
  0x12   :  { %307 = vmatpush.msra.mxu3 %v37_v2  ;;  %384 = vmatpush.msra.mxu0 %v37_v2  ;;  %s836_s6 = sld [smem:[#allocation3 + $0x2]] }
  0x13   :  { %77 = vmatpush.msra.mxu1 %v36_v3  ;;  %231 = vmatpush.msra.mxu2 %v36_v3  ;;  %s50_s24 = scalar_lea.vmem [#allocation4], %s830_s1  ;;  %s841_s9 = sld [smem:[#allocation3 + $0xb]] }
  0x14   :  { %78 = vmatmul.f32.vlgmr.msra.gmra.mxu1 %v998_v4  ;;  %308 = vmatpush.msra.mxu3 %v36_v3  ;;  %v51_v8 = vld [vmem:[%s50_s24] sm:$0x1]  ;;  %s47_s25 = scalar_lea.vmem [#allocation4], %s46_s23  ;;  %s840_s10 = sld [smem:[#allocation3 + $0x3]] }
  0x15   :  { %151 = vmatpush.msrb.mxu1 %v39_v0  ;;  %385 = vmatpush.msra.mxu0 %v36_v3  ;;  %v53_v9 = vrot.slane %v51_v8, 7  ;;  %v48_v10 = vld [vmem:[%s47_s25] sm:$0x1]  ;;  %s128_s30 = scalar_lea.vmem [#allocation4], %s833_s28  ;;  %s845_s13 = sld [smem:[#allocation3 + $0xc]] }
  0x16   :  { %536 = vmatpush.msrb.mxu2 %v39_v0  ;;  %613 = vmatpush.msrb.mxu3 %v39_v0  ;;  %v129_v39 = vld [vmem:[%s128_s30] sm:$0x1]  ;;  %s125_s4 = scalar_lea.vmem [#allocation4], %s832_s29  ;;  %s844_s14 = sld [smem:[#allocation3 + $0x4]] }
  0x17   :  { %152 = vmatpush.msrb.mxu1 %v38_v1  ;;  %v56_v11 = vsel %vm55_vm0, %v48_v10, %v53_v9  ;;  %v131_v40 = vrot.slane %v129_v39, 7  ;;  %v126_v41 = vld [vmem:[%s125_s4] sm:$0x1]  ;;  %s205_s7 = scalar_lea.vmem [#allocation4], %s837_s5  ;;  %s849_s17 = sld [smem:[#allocation3 + $0xd]] }
  0x18   :  { %537 = vmatpush.msrb.mxu2 %v38_v1  ;;  %614 = vmatpush.msrb.mxu3 %v38_v1  ;;  %s202_s8 = scalar_lea.vmem [#allocation4], %s836_s6  ;;  %s848_s18 = sld [smem:[#allocation3 + $0x5]] }
  0x19   :  { %153 = vmatpush.msrb.mxu1 %v37_v2  ;;  %v133_v42 = vsel %vm55_vm0, %v126_v41, %v131_v40  ;;  %v203_v9 = vld [vmem:[%s202_s8] sm:$0x1]  ;;  %s282_s11 = scalar_lea.vmem [#allocation4], %s841_s9  ;;  %s853_s21 = sld [smem:[#allocation3 + $0xe]] }
  0x1a   :  { %538 = vmatpush.msrb.mxu2 %v37_v2  ;;  %615 = vmatpush.msrb.mxu3 %v37_v2  ;;  %v283_v39 = vld [vmem:[%s282_s11] sm:$0x1]  ;;  %s279_s12 = scalar_lea.vmem [#allocation4], %s840_s10  ;;  %s852_s22 = sld [smem:[#allocation3 + $0x6]] }
  0x1b   :  { %154 = vmatpush.msrb.mxu1 %v36_v3  ;;  %v285_v40 = vrot.slane %v283_v39, 7  ;;  %v280_v41 = vld [vmem:[%s279_s12] sm:$0x1]  ;;  %s359_s15 = scalar_lea.vmem [#allocation4], %s845_s13  ;;  %s857_s24 = sld [smem:[#allocation3 + $0xf]] }
  0x1c   :  { %539 = vmatpush.msrb.mxu2 %v36_v3  ;;  %616 = vmatpush.msrb.mxu3 %v36_v3  ;;  %s356_s16 = scalar_lea.vmem [#allocation4], %s844_s14  ;;  %s856_s25 = sld [smem:[#allocation3 + $0x7]] }
  0x1d   :  { %459 = vmatpush.msra.mxu1 %v39_v0  ;;  %s436_s19 = scalar_lea.vmem [#allocation4], %s849_s17  ;;  %s802_s5 = sshll.u32 %s1160_s3, 4  ;;  %s803_s5 = int_to_ptr.hbm [resolvable:$true] %s802_s5 }
  0x1e   :  { %s433_s20 = scalar_lea.vmem [#allocation4], %s848_s18 }
  0x1f   :  { %460 = vmatpush.msra.mxu1 %v38_v1  ;;  %s513_s1 = scalar_lea.vmem [#allocation4], %s853_s21 }
  0x20   :  { %s510_s23 = scalar_lea.vmem [#allocation4], %s852_s22 }
  0x21   :  { %461 = vmatpush.msra.mxu1 %v37_v2  ;;  %s590_s28 = scalar_lea.vmem [#allocation4], %s857_s24 }
  0x22   :  { %s587_s29 = scalar_lea.vmem [#allocation4], %s856_s25 }
  0x23   :  { %462 = vmatpush.msra.mxu1 %v36_v3 }
  0x91   :  { %v79_v6 = vpop.f32.mrf.mxu1 }
  0x92   :  { %v80_v7 = vadd.f32 %v1030_v5, %v79_v6 }
  0x94   :  { %103 = vrot.lane.b32.xlu0 %v80_v7, %s999_s0  ;;  %v82_v12 = vadd.f32 %v80_v7, %v56_v11  ;;  %v206_v7 = vld [vmem:[%s205_s7] sm:$0x1] }
  0x95   :  { %v208_v8 = vrot.slane %v206_v7, 7 }
  0x96   :  { %v831_v13 = vmul.f32 -1.442695, %v82_v12 }
  0x97   :  { %v210_v10 = vsel %vm55_vm0, %v203_v9, %v208_v8  ;;  %v360_v8 = vld [vmem:[%s359_s15] sm:$0x1] }
  0x98   :  { %874 = vpow2.f32 %v831_v13  ;;  %v362_v9 = vrot.slane %v360_v8, 7 }
  0x9e   :  { %v875_v14 = vpop.eup %874 }
  0x9f   :  { %v86_v15 = vadd.f32 1.0, %v875_v14 }
  0xa1   :  { %876 = vrcp.f32 %v86_v15  ;;  %v98_v21 = vand.u32 2147483648, %v86_v15  ;;  %vm92_vm2 = vweird.f32 %v86_v15  ;;  %v96_v22 = vand.u32 2147483647, %v86_v15 }
  0xa3   :  { %v99_v24 = vor.u32 1.1754944e-38, %v98_v21  ;;  %vm97_vm4 = vcmp.eq.f32.partialorder %v96_v22, 8.507059e+37 }
  0xa7   :  { %v877_v16 = vpop.eup %876 }
  0xa8   :  { %v88_v17 = vmul.f32 %v877_v16, %v86_v15  ;;  %vm93_vm1 = vweird.f32 %v877_v16 }
  0xa9   :  { %vm94_vm3 = vmor %vm92_vm2, %vm93_vm1 }
  0xaa   :  { %v89_v18 = vsub.f32 1.0, %v88_v17 }
  0xac   :  { %v90_v19 = vmul.f32 %v877_v16, %v89_v18 }
  0xae   :  { %v91_v20 = vadd.f32 %v877_v16, %v90_v19 }
  0xb0   :  { %v95_v23 = vsel %vm94_vm3, %v877_v16, %v91_v20 }
  0xb1   :  { %v100_v26 = vsel %vm97_vm4, %v99_v24, %v95_v23 }
 0x106   :  { %v104_v25 = vpop.permute.xlu0 %103 }
 0x107   :  { %v106_v27 = vmul.f32 %v104_v25, %v100_v26 }
 0x109   :  { %108 = vrot.lane.b32.xlu0 %v106_v27, %s999_s0 }
 0x17b   :  { %v109_v28 = vpop.permute.xlu0 %108 }
 0x17c   :  { %v111_v29 = vadd.f32 %v109_v28, %v56_v11 }
 0x17e   :  { %878 = vtanh.f32 %v111_v29 }
 0x184   :  { %v879_v30 = vpop.eup %878 }
 0x185   :  { %v113_v31 = vsub.f32 0.0, %v879_v30 }
 0x187   :  { %115 = vrot.lane.b32.xlu1 %v113_v31, %s1000_s26 }
 0x1f9   :  { %v116_v32 = vpop.permute.xlu1 %115 }
 0x1fa   :  { %v118_v33 = vmul.f32 %v116_v32, %v100_v26 }
 0x1fc   :  { %120 = vrot.lane.b32.xlu1 %v118_v33, %s1001_s27 }
 0x26e   :  { %v121_v34 = vpop.permute.xlu1 %120 }
 0x26f   :  { %v1038_v35 = vadd.f32 %v879_v30, %v121_v34 }
 0x271   :  { %135 = vrot.lane.b32.xlu2 %v1038_v35, %s999_s0 }
 0x2cb   :  { %v136_v36 = vpop.permute.xlu2 %135 }
 0x2cc   :  { %834 = vmatmul.msk.f32.vlgmr.msrb.gmra.mxu1 %vm58_vm5, %v136_v36 }
 0x349   :  { %v156_v37 = vpop.f32.mrf.mxu1 }
 0x34a   :  { %v157_v38 = vadd.f32 %v1030_v5, %v156_v37 }
 0x34c   :  { %180 = vrot.lane.b32.xlu2 %v157_v38, %s999_s0  ;;  %v159_v43 = vadd.f32 %v157_v38, %v133_v42 }
 0x34e   :  { %v835_v44 = vmul.f32 -1.442695, %v159_v43 }
 0x350   :  { %880 = vpow2.f32 %v835_v44 }
 0x356   :  { %v881_v45 = vpop.eup %880 }
 0x357   :  { %v163_v46 = vadd.f32 1.0, %v881_v45 }
 0x359   :  { %882 = vrcp.f32 %v163_v46  ;;  %v175_v52 = vand.u32 2147483648, %v163_v46  ;;  %vm169_vm7 = vweird.f32 %v163_v46  ;;  %v173_v53 = vand.u32 2147483647, %v163_v46 }
 0x35b   :  { %v176_v55 = vor.u32 1.1754944e-38, %v175_v52  ;;  %vm174_vm9 = vcmp.eq.f32.partialorder %v173_v53, 8.507059e+37 }
 0x35f   :  { %v883_v47 = vpop.eup %882 }
 0x360   :  { %v165_v48 = vmul.f32 %v883_v47, %v163_v46  ;;  %vm170_vm6 = vweird.f32 %v883_v47 }
 0x361   :  { %vm171_vm8 = vmor %vm169_vm7, %vm170_vm6 }
 0x362   :  { %v166_v49 = vsub.f32 1.0, %v165_v48 }
 0x364   :  { %v167_v50 = vmul.f32 %v883_v47, %v166_v49 }
 0x366   :  { %v168_v51 = vadd.f32 %v883_v47, %v167_v50 }
 0x368   :  { %v172_v54 = vsel %vm171_vm8, %v883_v47, %v168_v51 }
 0x369   :  { %v177_v57 = vsel %vm174_vm9, %v176_v55, %v172_v54 }
 0x3a6   :  { %v181_v56 = vpop.permute.xlu2 %180 }
 0x3a7   :  { %v183_v58 = vmul.f32 %v181_v56, %v177_v57 }
 0x3a9   :  { %185 = vrot.lane.b32.xlu0 %v183_v58, %s999_s0 }
 0x41b   :  { %v186_v59 = vpop.permute.xlu0 %185 }
 0x41c   :  { %v188_v60 = vadd.f32 %v186_v59, %v133_v42  ;;  %v287_v42 = vsel %vm55_vm0, %v280_v41, %v285_v40  ;;  %v437_v41 = vld [vmem:[%s436_s19] sm:$0x1] }
 0x41e   :  { %884 = vtanh.f32 %v188_v60 }
 0x424   :  { %v885_v61 = vpop.eup %884 }
 0x425   :  { %v190_v62 = vsub.f32 %v1038_v35, %v885_v61 }
 0x427   :  { %192 = vrot.lane.b32.xlu1 %v190_v62, %s1000_s26 }
 0x499   :  { %v193_v63 = vpop.permute.xlu1 %192 }
 0x49a   :  { %v195_v0 = vmul.f32 %v193_v63, %v177_v57 }
 0x49c   :  { %197 = vrot.lane.b32.xlu2 %v195_v0, %s1001_s27 }
 0x4f6   :  { %v198_v1 = vpop.permute.xlu2 %197 }
 0x4f7   :  { %v1050_v2 = vadd.f32 %v885_v61, %v198_v1 }
 0x4f9   :  { %212 = vrot.lane.b32.xlu0 %v1050_v2, %s999_s0 }
 0x56b   :  { %v213_v3 = vpop.permute.xlu0 %212 }
 0x56c   :  { %838 = vmatmul.msk.f32.vlgmr.msra.gmra.mxu2 %vm58_vm5, %v213_v3 }
 0x5ef   :  { %v233_v4 = vpop.f32.mrf.mxu2 }
 0x5f0   :  { %v234_v6 = vadd.f32 %v1030_v5, %v233_v4 }
 0x5f2   :  { %257 = vrot.lane.b32.xlu1 %v234_v6, %s999_s0  ;;  %v236_v11 = vadd.f32 %v234_v6, %v210_v10 }
 0x5f4   :  { %v839_v12 = vmul.f32 -1.442695, %v236_v11 }
 0x5f6   :  { %886 = vpow2.f32 %v839_v12 }
 0x5fc   :  { %v887_v13 = vpop.eup %886 }
 0x5fd   :  { %v240_v14 = vadd.f32 1.0, %v887_v13 }
 0x5ff   :  { %888 = vrcp.f32 %v240_v14  ;;  %v252_v20 = vand.u32 2147483648, %v240_v14  ;;  %vm246_vm11 = vweird.f32 %v240_v14  ;;  %v250_v21 = vand.u32 2147483647, %v240_v14 }
 0x601   :  { %v253_v23 = vor.u32 1.1754944e-38, %v252_v20  ;;  %vm251_vm13 = vcmp.eq.f32.partialorder %v250_v21, 8.507059e+37 }
 0x605   :  { %v889_v15 = vpop.eup %888 }
 0x606   :  { %v242_v16 = vmul.f32 %v889_v15, %v240_v14  ;;  %vm247_vm10 = vweird.f32 %v889_v15 }
 0x607   :  { %vm248_vm12 = vmor %vm246_vm11, %vm247_vm10 }
 0x608   :  { %v243_v17 = vsub.f32 1.0, %v242_v16 }
 0x60a   :  { %v244_v18 = vmul.f32 %v889_v15, %v243_v17 }
 0x60c   :  { %v245_v19 = vadd.f32 %v889_v15, %v244_v18 }
 0x60e   :  { %v249_v22 = vsel %vm248_vm12, %v889_v15, %v245_v19 }
 0x60f   :  { %v254_v25 = vsel %vm251_vm13, %v253_v23, %v249_v22 }
 0x664   :  { %v258_v24 = vpop.permute.xlu1 %257 }
 0x665   :  { %v260_v26 = vmul.f32 %v258_v24, %v254_v25 }
 0x667   :  { %262 = vrot.lane.b32.xlu2 %v260_v26, %s999_s0 }
 0x6c1   :  { %v263_v27 = vpop.permute.xlu2 %262 }
 0x6c2   :  { %v265_v28 = vadd.f32 %v263_v27, %v210_v10  ;;  %v357_v10 = vld [vmem:[%s356_s16] sm:$0x1] }
 0x6c3   :  { %v364_v11 = vsel %vm55_vm0, %v357_v10, %v362_v9 }
 0x6c4   :  { %890 = vtanh.f32 %v265_v28 }
 0x6ca   :  { %v891_v29 = vpop.eup %890 }
 0x6cb   :  { %v267_v30 = vsub.f32 %v1050_v2, %v891_v29 }
 0x6cd   :  { %269 = vrot.lane.b32.xlu0 %v267_v30, %s1000_s26 }
 0x73f   :  { %v270_v31 = vpop.permute.xlu0 %269 }
 0x740   :  { %v272_v32 = vmul.f32 %v270_v31, %v254_v25 }
 0x742   :  { %274 = vrot.lane.b32.xlu1 %v272_v32, %s1001_s27 }
 0x7b4   :  { %v275_v33 = vpop.permute.xlu1 %274 }
 0x7b5   :  { %v1062_v34 = vadd.f32 %v891_v29, %v275_v33 }
 0x7b7   :  { %289 = vrot.lane.b32.xlu2 %v1062_v34, %s999_s0 }
 0x811   :  { %v290_v36 = vpop.permute.xlu2 %289 }
 0x812   :  { %842 = vmatmul.msk.f32.vlgmr.msra.gmra.mxu3 %vm58_vm5, %v290_v36 }
 0x895   :  { %v310_v37 = vpop.f32.mrf.mxu3 }
 0x896   :  { %v311_v38 = vadd.f32 %v1030_v5, %v310_v37 }
 0x898   :  { %334 = vrot.lane.b32.xlu0 %v311_v38, %s999_s0  ;;  %v313_v43 = vadd.f32 %v311_v38, %v287_v42 }
 0x89a   :  { %v843_v44 = vmul.f32 -1.442695, %v313_v43  ;;  %v434_v43 = vld [vmem:[%s433_s20] sm:$0x1] }
 0x89c   :  { %892 = vpow2.f32 %v843_v44 }
 0x8a2   :  { %v893_v45 = vpop.eup %892 }
 0x8a3   :  { %v317_v46 = vadd.f32 1.0, %v893_v45 }
 0x8a5   :  { %894 = vrcp.f32 %v317_v46  ;;  %v329_v52 = vand.u32 2147483648, %v317_v46  ;;  %vm323_vm15 = vweird.f32 %v317_v46  ;;  %v327_v53 = vand.u32 2147483647, %v317_v46 }
 0x8a7   :  { %v330_v55 = vor.u32 1.1754944e-38, %v329_v52  ;;  %vm328_vm2 = vcmp.eq.f32.partialorder %v327_v53, 8.507059e+37 }
 0x8ab   :  { %v895_v47 = vpop.eup %894 }
 0x8ac   :  { %v319_v48 = vmul.f32 %v895_v47, %v317_v46  ;;  %vm324_vm14 = vweird.f32 %v895_v47 }
 0x8ad   :  { %vm325_vm1 = vmor %vm323_vm15, %vm324_vm14 }
 0x8ae   :  { %v320_v49 = vsub.f32 1.0, %v319_v48 }
 0x8b0   :  { %v321_v50 = vmul.f32 %v895_v47, %v320_v49 }
 0x8b2   :  { %v322_v51 = vadd.f32 %v895_v47, %v321_v50 }
 0x8b4   :  { %v326_v54 = vsel %vm325_vm1, %v895_v47, %v322_v51 }
 0x8b5   :  { %v331_v57 = vsel %vm328_vm2, %v330_v55, %v326_v54 }
 0x90a   :  { %v335_v56 = vpop.permute.xlu0 %334 }
 0x90b   :  { %v337_v58 = vmul.f32 %v335_v56, %v331_v57 }
 0x90d   :  { %339 = vrot.lane.b32.xlu1 %v337_v58, %s999_s0 }
 0x97f   :  { %v340_v59 = vpop.permute.xlu1 %339 }
 0x980   :  { %v342_v60 = vadd.f32 %v340_v59, %v287_v42  ;;  %v439_v42 = vrot.slane %v437_v41, 7 }
 0x982   :  { %896 = vtanh.f32 %v342_v60  ;;  %v441_v44 = vsel %vm55_vm0, %v434_v43, %v439_v42 }
 0x988   :  { %v897_v61 = vpop.eup %896 }
 0x989   :  { %v344_v62 = vsub.f32 %v1062_v34, %v897_v61 }
 0x98b   :  { %346 = vrot.lane.b32.xlu2 %v344_v62, %s1000_s26 }
 0x9e5   :  { %v347_v63 = vpop.permute.xlu2 %346 }
 0x9e6   :  { %v349_v0 = vmul.f32 %v347_v63, %v331_v57 }
 0x9e8   :  { %351 = vrot.lane.b32.xlu0 %v349_v0, %s1001_s27 }
 0xa5a   :  { %v352_v1 = vpop.permute.xlu0 %351 }
 0xa5b   :  { %v1074_v3 = vadd.f32 %v897_v61, %v352_v1 }
 0xa5d   :  { %366 = vrot.lane.b32.xlu1 %v1074_v3, %s999_s0 }
 0xacf   :  { %v367_v4 = vpop.permute.xlu1 %366 }
 0xad0   :  { %846 = vmatmul.msk.f32.vlgmr.msra.gmra.mxu0 %vm58_vm5, %v367_v4 }
 0xb4d   :  { %v387_v6 = vpop.f32.mrf.mxu0 }
 0xb4e   :  { %v388_v7 = vadd.f32 %v1030_v5, %v387_v6 }
 0xb50   :  { %411 = vrot.lane.b32.xlu2 %v388_v7, %s999_s0  ;;  %v390_v12 = vadd.f32 %v388_v7, %v364_v11 }
 0xb52   :  { %v847_v13 = vmul.f32 -1.442695, %v390_v12 }
 0xb54   :  { %898 = vpow2.f32 %v847_v13  ;;  %v511_v13 = vld [vmem:[%s510_s23] sm:$0x1] }
 0xb5a   :  { %v899_v14 = vpop.eup %898 }
 0xb5b   :  { %v394_v15 = vadd.f32 1.0, %v899_v14 }
 0xb5d   :  { %900 = vrcp.f32 %v394_v15  ;;  %v406_v21 = vand.u32 2147483648, %v394_v15  ;;  %vm400_vm4 = vweird.f32 %v394_v15  ;;  %v404_v22 = vand.u32 2147483647, %v394_v15 }
 0xb5f   :  { %v407_v24 = vor.u32 1.1754944e-38, %v406_v21  ;;  %vm405_vm7 = vcmp.eq.f32.partialorder %v404_v22, 8.507059e+37 }
 0xb63   :  { %v901_v16 = vpop.eup %900 }
 0xb64   :  { %v396_v17 = vmul.f32 %v901_v16, %v394_v15  ;;  %vm401_vm3 = vweird.f32 %v901_v16 }
 0xb65   :  { %vm402_vm6 = vmor %vm400_vm4, %vm401_vm3 }
 0xb66   :  { %v397_v18 = vsub.f32 1.0, %v396_v17 }
 0xb68   :  { %v398_v19 = vmul.f32 %v901_v16, %v397_v18 }
 0xb6a   :  { %v399_v20 = vadd.f32 %v901_v16, %v398_v19 }
 0xb6c   :  { %v403_v23 = vsel %vm402_vm6, %v901_v16, %v399_v20  ;;  %vm678_vm6 = vcmask 1043456  }
 0xb6d   :  { %v408_v26 = vsel %vm405_vm7, %v407_v24, %v403_v23  ;;  %vm680_vm7 = vcmask 1045504  }
 0xbaa   :  { %v412_v25 = vpop.permute.xlu2 %411 }
 0xbab   :  { %v414_v27 = vmul.f32 %v412_v25, %v408_v26 }
 0xbad   :  { %416 = vrot.lane.b32.xlu0 %v414_v27, %s999_s0 }
 0xc1f   :  { %v417_v28 = vpop.permute.xlu0 %416 }
 0xc20   :  { %v419_v29 = vadd.f32 %v417_v28, %v364_v11  ;;  %v514_v11 = vld [vmem:[%s513_s1] sm:$0x1] }
 0xc21   :  { %v516_v12 = vrot.slane %v514_v11, 7 }
 0xc22   :  { %902 = vtanh.f32 %v419_v29 }
 0xc23   :  { %v518_v14 = vsel %vm55_vm0, %v511_v13, %v516_v12 }
 0xc28   :  { %v903_v30 = vpop.eup %902 }
 0xc29   :  { %v421_v31 = vsub.f32 %v1074_v3, %v903_v30 }
 0xc2b   :  { %423 = vrot.lane.b32.xlu1 %v421_v31, %s1000_s26 }
 0xc9d   :  { %v424_v32 = vpop.permute.xlu1 %423 }
 0xc9e   :  { %v426_v33 = vmul.f32 %v424_v32, %v408_v26 }
 0xca0   :  { %428 = vrot.lane.b32.xlu2 %v426_v33, %s1001_s27 }
 0xcfa   :  { %v429_v36 = vpop.permute.xlu2 %428 }
 0xcfb   :  { %v1086_v37 = vadd.f32 %v903_v30, %v429_v36 }
 0xcfd   :  { %443 = vrot.lane.b32.xlu0 %v1086_v37, %s999_s0 }
 0xd6f   :  { %v444_v38 = vpop.permute.xlu0 %443 }
 0xd70   :  { %850 = vmatmul.msk.f32.vlgmr.msra.gmra.mxu1 %vm58_vm5, %v444_v38 }
 0xded   :  { %v464_v39 = vpop.f32.mrf.mxu1 }
 0xdee   :  { %v465_v40 = vadd.f32 %v1030_v5, %v464_v39 }
 0xdf0   :  { %488 = vrot.lane.b32.xlu1 %v465_v40, %s999_s0  ;;  %v467_v45 = vadd.f32 %v465_v40, %v441_v44 }
 0xdf2   :  { %v851_v46 = vmul.f32 -1.442695, %v467_v45  ;;  %v591_v45 = vld [vmem:[%s590_s28] sm:$0x1] }
 0xdf4   :  { %904 = vpow2.f32 %v851_v46  ;;  %v593_v46 = vrot.slane %v591_v45, 7 }
 0xdfa   :  { %v905_v47 = vpop.eup %904 }
 0xdfb   :  { %v471_v48 = vadd.f32 1.0, %v905_v47  ;;  %v588_v47 = vld [vmem:[%s587_s29] sm:$0x1] }
 0xdfd   :  { %906 = vrcp.f32 %v471_v48  ;;  %v483_v54 = vand.u32 2147483648, %v471_v48  ;;  %vm477_vm9 = vweird.f32 %v471_v48  ;;  %v481_v55 = vand.u32 2147483647, %v471_v48 }
 0xdff   :  { %v484_v57 = vor.u32 1.1754944e-38, %v483_v54  ;;  %vm482_vm11 = vcmp.eq.f32.partialorder %v481_v55, 8.507059e+37 }
 0xe03   :  { %v907_v49 = vpop.eup %906 }
 0xe04   :  { %v473_v50 = vmul.f32 %v907_v49, %v471_v48  ;;  %vm478_vm8 = vweird.f32 %v907_v49  ;;  %v595_v48 = vsel %vm55_vm0, %v588_v47, %v593_v46  ;;  %vm676_vm0 = vcmask 1041408  }
 0xe05   :  { %vm479_vm10 = vmor %vm477_vm9, %vm478_vm8 }
 0xe06   :  { %v474_v51 = vsub.f32 1.0, %v473_v50 }
 0xe08   :  { %v475_v52 = vmul.f32 %v907_v49, %v474_v51 }
 0xe0a   :  { %v476_v53 = vadd.f32 %v907_v49, %v475_v52 }
 0xe0c   :  { %v480_v56 = vsel %vm479_vm10, %v907_v49, %v476_v53 }
 0xe0d   :  { %v485_v59 = vsel %vm482_vm11, %v484_v57, %v480_v56 }
 0xe62   :  { %v489_v58 = vpop.permute.xlu1 %488 }
 0xe63   :  { %v491_v60 = vmul.f32 %v489_v58, %v485_v59 }
 0xe65   :  { %493 = vrot.lane.b32.xlu2 %v491_v60, %s999_s0 }
 0xebf   :  { %v494_v61 = vpop.permute.xlu2 %493 }
 0xec0   :  { %v496_v62 = vadd.f32 %v494_v61, %v441_v44 }
 0xec2   :  { %908 = vtanh.f32 %v496_v62 }
 0xec8   :  { %v909_v63 = vpop.eup %908 }
 0xec9   :  { %v498_v0 = vsub.f32 %v1086_v37, %v909_v63 }
 0xecb   :  { %500 = vrot.lane.b32.xlu0 %v498_v0, %s1000_s26  ;;  %v663_v0 = vrot.slane %v1050_v2, 6 }
 0xf3d   :  { %v501_v1 = vpop.permute.xlu0 %500 }
 0xf3e   :  { %v503_v4 = vmul.f32 %v501_v1, %v485_v59  ;;  %v665_v1 = vrot.slane %v1062_v34, 4 }
 0xf40   :  { %505 = vrot.lane.b32.xlu1 %v503_v4, %s1001_s27  ;;  %v667_v4 = vrot.slane %v1074_v3, 2 }
 0xfb2   :  { %v506_v6 = vpop.permute.xlu1 %505 }
 0xfb3   :  { %v1098_v7 = vadd.f32 %v909_v63, %v506_v6  ;;  %v677_v6 = vsel %vm676_vm0, %v1038_v35, %v663_v0 }
 0xfb5   :  { %520 = vrot.lane.b32.xlu2 %v1098_v7, %s999_s0 }
0x100f   :  { %v521_v8 = vpop.permute.xlu2 %520 }
0x1010   :  { %854 = vmatmul.msk.f32.vlgmr.msrb.gmra.mxu2 %vm58_vm5, %v521_v8  ;;  %v679_v8 = vsel %vm678_vm6, %v677_v6, %v665_v1 }
0x1093   :  { %v541_v9 = vpop.f32.mrf.mxu2 }
0x1094   :  { %v542_v10 = vadd.f32 %v1030_v5, %v541_v9  ;;  %v681_v9 = vsel %vm680_vm7, %v679_v8, %v667_v4 }
0x1096   :  { %565 = vrot.lane.b32.xlu0 %v542_v10, %s999_s0  ;;  %v544_v15 = vadd.f32 %v542_v10, %v518_v14 }
0x1098   :  { %v855_v16 = vmul.f32 -1.442695, %v544_v15 }
0x109a   :  { %910 = vpow2.f32 %v855_v16 }
0x10a0   :  { %v911_v17 = vpop.eup %910 }
0x10a1   :  { %v548_v18 = vadd.f32 1.0, %v911_v17 }
0x10a3   :  { %912 = vrcp.f32 %v548_v18  ;;  %v560_v24 = vand.u32 2147483648, %v548_v18  ;;  %vm554_vm13 = vweird.f32 %v548_v18  ;;  %v558_v25 = vand.u32 2147483647, %v548_v18 }
0x10a5   :  { %v561_v27 = vor.u32 1.1754944e-38, %v560_v24  ;;  %vm559_vm15 = vcmp.eq.f32.partialorder %v558_v25, 8.507059e+37 }
0x10a9   :  { %v913_v19 = vpop.eup %912 }
0x10aa   :  { %v550_v20 = vmul.f32 %v913_v19, %v548_v18  ;;  %vm555_vm12 = vweird.f32 %v913_v19 }
0x10ab   :  { %vm556_vm14 = vmor %vm554_vm13, %vm555_vm12  ;;  %vm791_vm12 = vcmask 254976  }
0x10ac   :  { %v551_v21 = vsub.f32 1.0, %v550_v20 }
0x10ae   :  { %v552_v22 = vmul.f32 %v913_v19, %v551_v21 }
0x10b0   :  { %v553_v23 = vadd.f32 %v913_v19, %v552_v22  ;;  %v1002_v22 = vmov 32.0  }
0x10b2   :  { %v557_v26 = vsel %vm556_vm14, %v913_v19, %v553_v23 }
0x10b3   :  { %v562_v29 = vsel %vm559_vm15, %v561_v27, %v557_v26 }
0x1108   :  { %v566_v28 = vpop.permute.xlu0 %565 }
0x1109   :  { %v568_v30 = vmul.f32 %v566_v28, %v562_v29 }
0x110b   :  { %570 = vrot.lane.b32.xlu1 %v568_v30, %s999_s0 }
0x117d   :  { %v571_v31 = vpop.permute.xlu1 %570 }
0x117e   :  { %v573_v32 = vadd.f32 %v571_v31, %v518_v14  ;;  %v669_v14 = vrot.slane %v1098_v7, 6 }
0x1180   :  { %914 = vtanh.f32 %v573_v32  ;;  %v682_v19 = vsel %vm676_vm0, %v1086_v37, %v669_v14 }
0x1186   :  { %v915_v33 = vpop.eup %914 }
0x1187   :  { %v575_v36 = vsub.f32 %v1098_v7, %v915_v33 }
0x1189   :  { %577 = vrot.lane.b32.xlu2 %v575_v36, %s1000_s26 }
0x11e3   :  { %v578_v38 = vpop.permute.xlu2 %577 }
0x11e4   :  { %v580_v39 = vmul.f32 %v578_v38, %v562_v29 }
0x11e6   :  { %582 = vrot.lane.b32.xlu0 %v580_v39, %s1001_s27 }
0x1258   :  { %v583_v40 = vpop.permute.xlu0 %582 }
0x1259   :  { %v1110_v41 = vadd.f32 %v915_v33, %v583_v40 }
0x125b   :  { %597 = vrot.lane.b32.xlu1 %v1110_v41, %s999_s0  ;;  %v671_v15 = vrot.slane %v1110_v41, 4 }
0x125d   :  { %v683_v20 = vsel %vm678_vm6, %v682_v19, %v671_v15 }
0x12cd   :  { %v598_v42 = vpop.permute.xlu1 %597 }
0x12ce   :  { %858 = vmatmul.msk.f32.vlgmr.msrb.gmra.mxu3 %vm58_vm5, %v598_v42 }
0x1351   :  { %v618_v43 = vpop.f32.mrf.mxu3 }
0x1352   :  { %v619_v44 = vadd.f32 %v1030_v5, %v618_v43 }
0x1354   :  { %642 = vrot.lane.b32.xlu2 %v619_v44, %s999_s0  ;;  %v621_v49 = vadd.f32 %v619_v44, %v595_v48 }
0x1356   :  { %v859_v50 = vmul.f32 -1.442695, %v621_v49 }
0x1358   :  { %916 = vpow2.f32 %v859_v50 }
0x135e   :  { %v917_v51 = vpop.eup %916 }
0x135f   :  { %v625_v52 = vadd.f32 1.0, %v917_v51 }
0x1361   :  { %918 = vrcp.f32 %v625_v52  ;;  %v637_v57 = vand.u32 2147483648, %v625_v52  ;;  %vm631_vm2 = vweird.f32 %v625_v52  ;;  %v635_v58 = vand.u32 2147483647, %v625_v52 }
0x1363   :  { %v638_v60 = vor.u32 1.1754944e-38, %v637_v57  ;;  %vm636_vm4 = vcmp.eq.f32.partialorder %v635_v58, 8.507059e+37  ;;  %v42_v57 = vld [vmem:[#allocation4 + $0x68] sm:$0xff]  ;;  %v41_v58 = vld [vmem:[#allocation4 + $0x60] sm:$0xff] }
0x1367   :  { %v919_v53 = vpop.eup %918 }
0x1368   :  { %v627_v54 = vmul.f32 %v919_v53, %v625_v52  ;;  %vm632_vm1 = vweird.f32 %v919_v53 }
0x1369   :  { %vm633_vm3 = vmor %vm631_vm2, %vm632_vm1 }
0x136a   :  { %v628_v5 = vsub.f32 1.0, %v627_v54 }
0x136c   :  { %v629_v55 = vmul.f32 %v919_v53, %v628_v5 }
0x136e   :  { %v630_v56 = vadd.f32 %v919_v53, %v629_v55  ;;  %v44_v55 = vld [vmem:[#allocation4 + $0x78] sm:$0xff] }
0x136f   :  { %775 = vmatpush.msrb.mxu0 %v44_v55 }
0x1370   :  { %v634_v59 = vsel %vm633_vm3, %v919_v53, %v630_v56  ;;  %v43_v56 = vld [vmem:[#allocation4 + $0x70] sm:$0xff] }
0x1371   :  { %v639_v62 = vsel %vm636_vm4, %v638_v60, %v634_v59  ;;  %776 = vmatpush.msrb.mxu0 %v43_v56 }
0x1373   :  { %777 = vmatpush.msrb.mxu0 %v42_v57 }
0x1375   :  { %778 = vmatpush.msrb.mxu0 %v41_v58 }
0x13ae   :  { %v643_v61 = vpop.permute.xlu2 %642 }
0x13af   :  { %v645_v63 = vmul.f32 %v643_v61, %v639_v62 }
0x13b1   :  { %647 = vrot.lane.b32.xlu0 %v645_v63, %s999_s0 }
0x13b9   :  { %687 = vrot.lane.b32.xlu0 %v681_v9, %s999_s0 }
0x1423   :  { %v648_v10 = vpop.permute.xlu0 %647 }
0x1424   :  { %v650_v11 = vadd.f32 %v648_v10, %v595_v48 }
0x1426   :  { %920 = vtanh.f32 %v650_v11 }
0x1427   :  { %922 = vrcp.f32 %v1002_v22 }
0x142b   :  { %v688_v13 = vpop.permute.xlu0 %687 }
0x142c   :  { %v921_v2 = vpop.eup %920  ;;  %v693_v35 = vsel %vm58_vm5, %v688_v13, 0.0 }
0x142d   :  { %v652_v34 = vsub.f32 %v1110_v41, %v921_v2  ;;  %v923_v23 = vpop.eup %922 }
0x142e   :  { %v700_v24 = vmul.f32 32.0, %v923_v23  ;;  %vm704_vm8 = vweird.f32 %v923_v23 }
0x142f   :  { %654 = vrot.lane.b32.xlu1 %v652_v34, %s1000_s26  ;;  %s1003_s26 = smov [#allocation7]  }
0x1430   :  { %v701_v25 = vsub.f32 1.0, %v700_v24 }
0x1432   :  { %v702_v7 = vmul.f32 %v923_v23, %v701_v25 }
0x1434   :  { %v703_v26 = vadd.f32 %v923_v23, %v702_v7 }
0x1436   :  { %v705_v27 = vsel %vm704_vm8, %v923_v23, %v703_v26 }
0x14a1   :  { %v655_v3 = vpop.permute.xlu1 %654 }
0x14a2   :  { %v657_v12 = vmul.f32 %v655_v3, %v639_v62 }
0x14a4   :  { %659 = vrot.lane.b32.xlu2 %v657_v12, %s1001_s27  ;;  %s800_s27 = sshll.u32 %s1003_s26, 4  ;;  %s801_s27 = int_to_ptr.vmem [resolvable:$true] %s800_s27 }
0x14cd   :  { %694 = vadd.xlane.f32.xlu2 %v693_v35 }
0x14fe   :  { %v660_v16 = vpop.permute.xlu2 %659 }
0x14ff   :  { %v662_v17 = vadd.f32 %v921_v2, %v660_v16  ;;  %v873_v2 = vld [vmem:[#allocation4 + $0x88] ss:$0 sm:$0xff] }
0x1501   :  { %v674_v18 = vrot.slane %v662_v17, 2 }
0x1503   :  { %v684_v21 = vsel %vm680_vm7, %v683_v20, %v674_v18 }
0x1504   :  { %689 = vrot.lane.b32.xlu1 %v684_v21, %s999_s0 }
0x1540   :  { %v695_v28 = vpop.xlane.xlu2 %694 }
0x1541   :  { %v706_v29 = vmul.f32 %v705_v27, %v695_v28 }
0x1543   :  { %v708_v30 = vsub.f32 %v681_v9, %v706_v29 }
0x1545   :  { %v710_v31 = vmul.f32 %v708_v30, %v708_v30 }
0x1547   :  { %714 = vrot.lane.b32.xlu1 %v710_v31, %s999_s0 }
0x1576   :  { %v690_v37 = vpop.permute.xlu1 %689 }
0x1577   :  { %v696_v32 = vsel %vm58_vm5, %v690_v37, 0.0 }
0x1578   :  { %697 = vadd.xlane.f32.xlu0 %v696_v32 }
0x15b9   :  { %v715_v40 = vpop.permute.xlu1 %714 }
0x15ba   :  { %v720_v41 = vsel %vm58_vm5, %v715_v40, 0.0 }
0x15eb   :  { %v698_v33 = vpop.xlane.xlu0 %697 }
0x15ec   :  { %v707_v36 = vmul.f32 %v705_v27, %v698_v33 }
0x15ee   :  { %v709_v38 = vsub.f32 %v684_v21, %v707_v36 }
0x15f0   :  { %v711_v39 = vmul.f32 %v709_v38, %v709_v38 }
0x15f2   :  { %716 = vrot.lane.b32.xlu1 %v711_v39, %s999_s0 }
0x161c   :  { %721 = vadd.xlane.f32.xlu1 %v720_v41 }
0x1635   :  { %788 = vrot.lane.b32.xlu1 %v662_v17, %s999_s0 }
0x1664   :  { %v717_v42 = vpop.permute.xlu1 %716 }
0x1665   :  { %v723_v43 = vsel %vm58_vm5, %v717_v42, 0.0 }
0x1666   :  { %724 = vadd.xlane.f32.xlu2 %v723_v43 }
0x168f   :  { %v722_v44 = vpop.xlane.xlu1 %721 }
0x1690   :  { %v726_v45 = vmul.f32 %v722_v44, %v705_v27 }
0x1692   :  { %v728_v46 = vadd.f32 1e-05, %v726_v45 }
0x1694   :  { %924 = vrsqrt.f32 %v728_v46  ;;  %vm736_vm10 = vweird.f32 %v728_v46 }
0x169a   :  { %v925_v47 = vpop.eup %924 }
0x169b   :  { %v731_v48 = vmul.f32 %v925_v47, %v728_v46  ;;  %vm737_vm9 = vweird.f32 %v925_v47 }
0x169c   :  { %vm738_vm11 = vmor %vm736_vm10, %vm737_vm9 }
0x169d   :  { %v732_v49 = vmul.f32 %v925_v47, %v731_v48 }
0x169f   :  { %v733_v50 = vmul.f32 0.5, %v732_v49 }
0x16a1   :  { %v734_v51 = vsub.f32 1.5, %v733_v50 }
0x16a3   :  { %v735_v52 = vmul.f32 %v925_v47, %v734_v51 }
0x16a5   :  { %v739_v53 = vsel %vm738_vm11, %v925_v47, %v735_v52 }
0x16a6   :  { %v750_v54 = vmul.f32 %v739_v53, %v708_v30 }
0x16a7   :  { %v789_v5 = vpop.permute.xlu1 %788 }
0x16a8   :  { %792 = vst.msk [vmem:[#allocation7] sm:$0x3] %vm791_vm12, %v789_v5  ;;  %755 = vrot.lane.b32.xlu2 %v750_v54, %s999_s0 }
0x16a9   :  { %805 = dma.vmem_to_hbm [thread:$0]  %s801_s27, 32, %s803_s5, [#allocation6]  }
0x16d9   :  { %v725_v59 = vpop.xlane.xlu2 %724 }
0x16da   :  { %v727_v60 = vmul.f32 %v725_v59, %v705_v27 }
0x16dc   :  { %v729_v61 = vadd.f32 1e-05, %v727_v60 }
0x16de   :  { %926 = vrsqrt.f32 %v729_v61  ;;  %vm746_vm14 = vweird.f32 %v729_v61 }
0x16e4   :  { %v927_v62 = vpop.eup %926 }
0x16e5   :  { %v741_v63 = vmul.f32 %v927_v62, %v729_v61  ;;  %vm747_vm13 = vweird.f32 %v927_v62 }
0x16e6   :  { %vm748_vm15 = vmor %vm746_vm14, %vm747_vm13 }
0x16e7   :  { %v742_v0 = vmul.f32 %v927_v62, %v741_v63 }
0x16e9   :  { %v743_v1 = vmul.f32 0.5, %v742_v0 }
0x16eb   :  { %v744_v4 = vsub.f32 1.5, %v743_v1 }
0x16ed   :  { %v745_v6 = vmul.f32 %v927_v62, %v744_v4 }
0x16ef   :  { %v749_v8 = vsel %vm748_vm15, %v927_v62, %v745_v6 }
0x16f0   :  { %v751_v9 = vmul.f32 %v749_v8, %v709_v38 }
0x16f2   :  { %757 = vrot.lane.b32.xlu0 %v751_v9, %s999_s0 }
0x1702   :  { %v756_v10 = vpop.permute.xlu2 %755 }
0x1703   :  { %860 = vmatmul.msk.f32.vlgmr.msrb.gmra.mxu0 %vm58_vm5, %v756_v10 }
0x1764   :  { %v758_v11 = vpop.permute.xlu0 %757 }
0x1765   :  { %861 = vmatmul.msk.f32.gmra.mxu0 %vm58_vm5, %v758_v11 }
0x1780   :  { %v780_v34 = vpop.f32.mrf.mxu0 }
0x1781   :  { %v781_v3 = vadd.f32 %v873_v2, %v780_v34 }
0x1783   :  { %786 = vst [vmem:[%s1159_s2] sm:$0xff] %v781_v3 }
0x17e2   :  { %v783_v12 = vpop.f32.mrf.mxu0 }
0x17e3   :  { %v784_v13 = vadd.f32 %v873_v2, %v783_v12 }
0x17e5   :  { %787 = vst [vmem:[%s1159_s2 + $0x8] sm:$0xff] %v784_v13 }
0x17e6   :  { %992 = dma.done.wait [#allocation6], 32  }
0x17e7   :  { %993 = vsyncadd [#allocation6], 4294967264 }
0x17e8   :  { %812 = vsyncpa [#allocation5], 1 }
0x17e9   :  { %813 = vsyncpa [#allocation6], 1 }

</bundles_post_ra>
